<compile_context>
chip_gen: v6e
topology: v6e:2x2x1
jax: 0.10.0
libtpu: 0.0.40
codegen_flags: <defaults>
</compile_context>

<pallas_src>
import functools

import jax
import jax.numpy as jnp
from jax.experimental import pallas as pl
from jax.experimental.pallas import tpu as pltpu


def _round_up(x, m):
    return ((x + m - 1) // m) * m


def _int_pow(x, e):
    """x**e for small non-negative integer e via repeated multiply (VPU only)."""
    if e <= 0:
        return jnp.ones_like(x)
    acc = x
    for _ in range(e - 1):
        acc = acc * x
    return acc


def _rational_hat_kernel(batch_ref, nd_ref, centers_ref, radius_ref, out_ref,
                         *, exponent, point_dim):
    # batch_ref:   (TB, TP, D)   point tile
    # nd_ref:      (TB, 1, TP)   not-dummy mask (matmul lhs; TP lane-dense)
    # centers_ref: (D, TN)       centers^T tile (lane-dense on N)
    # radius_ref:  (1, TN)       |radius| tile (abs hoisted to the wrapper)
    # out_ref:     (TB, 1, TN)   resident VMEM accumulator across the point-tile axis
    @pl.when(pl.program_id(2) == 0)
    def _init():
        out_ref[...] = jnp.zeros_like(out_ref)

    # L1 distance, unrolled over the tiny point dimension D. Slices keep a
    # size-1 minor dim so the broadcast is a cheap lane splat (no relayout);
    # every temporary stays a lane-dense (TB, TP, TN) tile on the VPU.
    dist = None
    for d in range(point_dim):
        c_row = centers_ref[d:d + 1, :][None]            # (1, 1, TN)
        p_col = batch_ref[:, :, d:d + 1]                 # (TB, TP, 1)
        term = jnp.abs(p_col - c_row)                    # (TB, TP, TN)
        dist = term if dist is None else dist + term

    r = radius_ref[...][None]                            # (1, 1, TN), already |radius|
    a = 1.0 + dist                                       # positive-part denominator
    b = 1.0 + jnp.abs(r - dist)                          # negative-part denominator
    a_e = _int_pow(a, exponent)
    b_e = _int_pow(b, exponent)

    # pos - neg = 1/a_e - 1/b_e = (b_e - a_e) / (a_e * b_e): a single reciprocal,
    # issued on the EUP (approx) + one Newton-Raphson refinement on the VPU.
    denom = a_e * b_e
    inv = pl.reciprocal(denom, approx=True)
    inv = inv * (2.0 - denom * inv)                      # ~1e-7 relative error
    x = (b_e - a_e) * inv                                # (TB, TP, TN)

    # Mask multiply + point reduction fused into one batched MXU contraction:
    # (TB, 1, TP) @ (TB, TP, TN) -> (TB, 1, TN).  MXU is otherwise idle here.
    out_ref[...] += jnp.einsum('bqp,bpn->bqn', nd_ref[...], x,
                               preferred_element_type=jnp.float32)


def slayer_rational_hat(batch, not_dummy, centers, radius, exponent=1,
                        *, tile_b=8, tile_p=256, tile_n=256):
    """Pallas forward of SLayerRationalHat on a prepared batch.

    batch:     (B, P, D) float32
    not_dummy: (B, P)    float32 (1.0 = real point, 0.0 = padding)
    centers:   (N, D)    float32
    radius:    (N,)      float32
    returns:   (B, N)    float32
    """
    if float(exponent) != int(exponent):
        raise ValueError("SLayerRationalHat kernel supports integer exponents only "
                         f"(module casts with int()); got {exponent}.")
    exponent = int(exponent)
    if exponent < 0:
        raise ValueError("exponent must be >= 0")

    B, P, D = batch.shape
    N = centers.shape[0]
    f32 = jnp.float32

    # --- tile / pad sizes -----------------------------------------------------
    # Batch tile: keep >= 2 "parallel" grid tiles when B > 1 (v7x has 2 TCs).
    # TB is unconstrained by the (8,128) rule: it never sits in a block's last
    # two dims with this layout.
    TB = max(1, min(tile_b, (B + 1) // 2))
    B_pad = _round_up(B, TB)

    # N tile: lane-dense multiple of 128 with its own "parallel" grid axis
    # (bounds the (TB, TP, TN) temporaries for large N on v5e/v7x VMEM budgets).
    N_lane = _round_up(max(N, 128), 128)
    TN = min(_round_up(max(tile_n, 128), 128), N_lane)
    N_pad = _round_up(N_lane, TN)

    # Point tile: trailing "arbitrary" reduction axis. When there is more than
    # one point tile, TP must be a multiple of 128 (it is the lane dim of the
    # mask block); otherwise it equals the (8-aligned) full point extent.
    if P <= tile_p:
        TP = _round_up(max(P, 8), 8)
        P_pad = TP
    else:
        TP = max(128, (tile_p // 128) * 128)
        P_pad = _round_up(P, TP)

    # --- pad inputs to TPU-friendly shapes ------------------------------------
    batch_p = jnp.zeros((B_pad, P_pad, D), f32).at[:B, :P, :].set(batch.astype(f32))
    # not_dummy as a (B, 1, P) slab: lane-dense on P, used directly as the lhs
    # of the fused mask+reduce matmul.
    nd_p = jnp.zeros((B_pad, 1, P_pad), f32).at[:B, 0, :P].set(not_dummy.astype(f32))
    # centers pre-transposed -> (D, N_pad); padded columns (center=0, radius=0)
    # give a == b -> numerator exactly 0, and are sliced off below.
    centers_t = jnp.zeros((D, N_pad), f32).at[:, :N].set(centers.astype(f32).T)
    # |radius| hoisted out of the kernel.
    radius_p = jnp.zeros((1, N_pad), f32).at[0, :N].set(jnp.abs(radius.astype(f32)))

    kernel = functools.partial(_rational_hat_kernel, exponent=exponent, point_dim=D)

    out = pl.pallas_call(
        kernel,
        out_shape=jax.ShapeDtypeStruct((B_pad, 1, N_pad), f32),
        grid_spec=pl.GridSpec(
            grid=(B_pad // TB, N_pad // TN, P_pad // TP),
            in_specs=[
                pl.BlockSpec((TB, TP, D), lambda i, n, p: (i, p, 0)),   # points
                pl.BlockSpec((TB, 1, TP), lambda i, n, p: (i, 0, p)),   # mask
                pl.BlockSpec((D, TN), lambda i, n, p: (0, n)),          # centers^T
                pl.BlockSpec((1, TN), lambda i, n, p: (0, n)),          # |radius|
            ],
            # Output block index ignores p -> resident VMEM accumulator over the
            # point-tile (reduction) axis; lane-dense (multiple-of-128) stores.
            out_specs=pl.BlockSpec((TB, 1, TN), lambda i, n, p: (i, 0, n)),
        ),
        compiler_params=pltpu.CompilerParams(
            dimension_semantics=("parallel", "parallel", "arbitrary"),
            vmem_limit_bytes=32 * 1024 * 1024,   # safe on v5e/v6e/v7x; tiles fit well under
        ),
    )(batch_p, nd_p, centers_t, radius_p)

    return out[:B, 0, :N].astype(batch.dtype)


def slayer_rational_hat_ref(batch, not_dummy, centers, radius, exponent=1):
    """Plain-JAX reference mirroring the PyTorch forward."""
    dist = jnp.sum(
        jnp.abs(centers[None, :, None, :] - batch[:, None, :, :]), axis=-1
    )                                                       # (B, N, P)
    r = jnp.abs(radius)[None, :, None]
    pos = 1.0 / (1.0 + dist) ** exponent
    neg = 1.0 / (1.0 + jnp.abs(r - dist)) ** exponent
    x = (pos - neg) * not_dummy[:, None, :]
    return jnp.sum(x, axis=2)                               # (B, N)


if __name__ == "__main__":
    # Module config (deterministic, in-script init):
    n_elements = 16        # N
    point_dimension = 2    # D
    exponent = 1
    batch_size = 2         # B
    max_points = 8         # P (highest multiset cardinality in the batch)

    key = jax.random.PRNGKey(0)
    k_pts, k_ctr = jax.random.split(key)

    # Prepared batch: points, with the second multiset padded (last 3 points dummy).
    # TODO(synk): prepare_batch (list-of-tensors -> padded batch) is host-side
    # bookkeeping; it is emulated here directly rather than inside the kernel.
    batch = jax.random.uniform(
        k_pts, (batch_size, max_points, point_dimension), dtype=jnp.float32
    )
    not_dummy = jnp.ones((batch_size, max_points), dtype=jnp.float32)
    not_dummy = not_dummy.at[1, 5:].set(0.0)
    batch = batch * not_dummy[:, :, None]   # dummy points are zeros, as in prepare_batch

    # Parameters: centers ~ U[0,1) (torch.rand default), radius filled with 1.0.
    centers = jax.random.uniform(
        k_ctr, (n_elements, point_dimension), dtype=jnp.float32
    )
    radius = jnp.full((n_elements,), 1.0, dtype=jnp.float32)

    out = slayer_rational_hat(batch, not_dummy, centers, radius, exponent)
    out = jax.block_until_ready(out)

    ref = slayer_rational_hat_ref(batch, not_dummy, centers, radius, exponent)
    assert out.shape == (batch_size, n_elements)
    assert jnp.allclose(out, ref, atol=1e-5, rtol=1e-5)

    print("KERNEL_OK")
</pallas_src>

<mosaic_0001>
module attributes {stable_mosaic.version = 11 : i64} {
  func.func @_rational_hat_kernel(%arg0: i32, %arg1: i32, %arg2: i32, %arg3: memref<1x8x2xf32, #tpu.memory_space<vmem>>, %arg4: memref<1x1x8xf32, #tpu.memory_space<vmem>>, %arg5: memref<2x128xf32, #tpu.memory_space<vmem>>, %arg6: memref<1x128xf32, #tpu.memory_space<vmem>>, %arg7: memref<1x1x128xf32, #tpu.memory_space<vmem>>) attributes {dimension_semantics = [#tpu.dimension_semantics<parallel>, #tpu.dimension_semantics<parallel>, #tpu.dimension_semantics<arbitrary>], iteration_bounds = array<i64: 2, 1, 1>, scalar_prefetch = 0 : i64, scratch_operands = 0 : i64, tpu.core_type = #tpu.core_type<tc>, window_params = [{transform_indices = @transform_0, window_bounds = array<i64: 1, 8, 2>}, {transform_indices = @transform_1, window_bounds = array<i64: 1, 1, 8>}, {transform_indices = @transform_2, window_bounds = array<i64: 2, 128>}, {transform_indices = @transform_3, window_bounds = array<i64: 1, 128>}, {transform_indices = @transform_4, window_bounds = array<i64: 1, 1, 128>}]} {
    %c0_i32 = arith.constant 0 : i32
    %0 = arith.cmpi eq, %arg2, %c0_i32 : i32
    %1 = arith.extui %0 : i1 to i32
    %c0_i32_0 = arith.constant 0 : i32
    %2 = arith.cmpi ne, %1, %c0_i32_0 : i32
    scf.if %2 {
      %cst_23 = arith.constant 0.000000e+00 : f32
      %40 = vector.broadcast %cst_23 : f32 to vector<1x1x128xf32>
      %c0_24 = arith.constant 0 : index
      %c0_25 = arith.constant 0 : index
      %c0_26 = arith.constant 0 : index
      %41 = vector.load %arg7[%c0_24, %c0_25, %c0_26] : memref<1x1x128xf32, #tpu.memory_space<vmem>>, vector<1x1x128xf32>
      tpu.vector_store %arg7[%c0_24, %c0_25, %c0_26], %40 {strides = array<i32>} : memref<1x1x128xf32, #tpu.memory_space<vmem>>, vector<1x1x128xf32>,
    } else {
    }
    %c0 = arith.constant 0 : index
    %c0_1 = arith.constant 0 : index
    %3 = vector.load %arg5[%c0, %c0_1] : memref<2x128xf32, #tpu.memory_space<vmem>>, vector<1x128xf32>
    %4 = vector.shape_cast %3 : vector<1x128xf32> to vector<1x1x128xf32>
    %c0_2 = arith.constant 0 : index
    %c0_3 = arith.constant 0 : index
    %c0_4 = arith.constant 0 : index
    %5 = vector.load %arg3[%c0_2, %c0_3, %c0_4] : memref<1x8x2xf32, #tpu.memory_space<vmem>>, vector<1x8x1xf32>
    %6 = vector.broadcast %5 : vector<1x8x1xf32> to vector<1x8x128xf32>
    %7 = vector.broadcast %4 : vector<1x1x128xf32> to vector<1x8x128xf32>
    %8 = arith.subf %6, %7 : vector<1x8x128xf32>
    %9 = math.absf %8 : vector<1x8x128xf32>
    %c1 = arith.constant 1 : index
    %c0_5 = arith.constant 0 : index
    %10 = vector.load %arg5[%c1, %c0_5] : memref<2x128xf32, #tpu.memory_space<vmem>>, vector<1x128xf32>
    %11 = vector.shape_cast %10 : vector<1x128xf32> to vector<1x1x128xf32>
    %c0_6 = arith.constant 0 : index
    %c0_7 = arith.constant 0 : index
    %c1_8 = arith.constant 1 : index
    %12 = vector.load %arg3[%c0_6, %c0_7, %c1_8] : memref<1x8x2xf32, #tpu.memory_space<vmem>>, vector<1x8x1xf32>
    %13 = vector.broadcast %12 : vector<1x8x1xf32> to vector<1x8x128xf32>
    %14 = vector.broadcast %11 : vector<1x1x128xf32> to vector<1x8x128xf32>
    %15 = arith.subf %13, %14 : vector<1x8x128xf32>
    %16 = math.absf %15 : vector<1x8x128xf32>
    %17 = arith.addf %9, %16 : vector<1x8x128xf32>
    %c0_9 = arith.constant 0 : index
    %c0_10 = arith.constant 0 : index
    %18 = vector.load %arg6[%c0_9, %c0_10] : memref<1x128xf32, #tpu.memory_space<vmem>>, vector<1x128xf32>
    %19 = vector.shape_cast %18 : vector<1x128xf32> to vector<1x1x128xf32>
    %cst = arith.constant 1.000000e+00 : f32
    %20 = vector.broadcast %cst : f32 to vector<1x8x128xf32>
    %21 = arith.addf %20, %17 : vector<1x8x128xf32>
    %22 = vector.broadcast %19 : vector<1x1x128xf32> to vector<1x8x128xf32>
    %23 = arith.subf %22, %17 : vector<1x8x128xf32>
    %24 = math.absf %23 : vector<1x8x128xf32>
    %cst_11 = arith.constant 1.000000e+00 : f32
    %25 = vector.broadcast %cst_11 : f32 to vector<1x8x128xf32>
    %26 = arith.addf %25, %24 : vector<1x8x128xf32>
    %27 = arith.mulf %21, %26 : vector<1x8x128xf32>
    %28 = tpu.reciprocal %27 {approx = true} : vector<1x8x128xf32> -> vector<1x8x128xf32>
    %29 = arith.mulf %27, %28 : vector<1x8x128xf32>
    %cst_12 = arith.constant 2.000000e+00 : f32
    %30 = vector.broadcast %cst_12 : f32 to vector<1x8x128xf32>
    %31 = arith.subf %30, %29 : vector<1x8x128xf32>
    %32 = arith.mulf %28, %31 : vector<1x8x128xf32>
    %33 = arith.subf %26, %21 : vector<1x8x128xf32>
    %34 = arith.mulf %33, %32 : vector<1x8x128xf32>
    %c0_13 = arith.constant 0 : index
    %c0_14 = arith.constant 0 : index
    %c0_15 = arith.constant 0 : index
    %35 = vector.load %arg7[%c0_13, %c0_14, %c0_15] : memref<1x1x128xf32, #tpu.memory_space<vmem>>, vector<1x1x128xf32>
    %c0_16 = arith.constant 0 : index
    %c0_17 = arith.constant 0 : index
    %c0_18 = arith.constant 0 : index
    %36 = vector.load %arg4[%c0_16, %c0_17, %c0_18] : memref<1x1x8xf32, #tpu.memory_space<vmem>>, vector<1x1x8xf32>
    "tpu.trace_start"() <{level = 10 : i32, message = "bqp,bpn->bqn"}> : () -> ()
    %cst_19 = arith.constant dense<0.000000e+00> : vector<1x1x128xf32>
    %37 = tpu.matmul %36, %34, %cst_19 {dimension_numbers = #tpu.dot_dimension_numbers<[2], [1], [1], [2], [0, 0, 0, 1, 1, 2], [0], [0]>} : vector<1x1x8xf32>, vector<1x8x128xf32>, vector<1x1x128xf32> -> vector<1x1x128xf32>
    "tpu.trace_stop"() : () -> ()
    %38 = arith.addf %35, %37 : vector<1x1x128xf32>
    %c0_20 = arith.constant 0 : index
    %c0_21 = arith.constant 0 : index
    %c0_22 = arith.constant 0 : index
    %39 = vector.load %arg7[%c0_20, %c0_21, %c0_22] : memref<1x1x128xf32, #tpu.memory_space<vmem>>, vector<1x1x128xf32>
    tpu.vector_store %arg7[%c0_20, %c0_21, %c0_22], %38 {strides = array<i32>} : memref<1x1x128xf32, #tpu.memory_space<vmem>>, vector<1x1x128xf32>,
    return
  }
  func.func @transform_0(%arg0: i32, %arg1: i32, %arg2: i32) -> (i32, i32, i32) {
    %c0_i32 = arith.constant 0 : i32
    %c0_i32_0 = arith.constant 0 : i32
    return %arg0, %arg2, %c0_i32 : i32, i32, i32
  }
  func.func @transform_1(%arg0: i32, %arg1: i32, %arg2: i32) -> (i32, i32, i32) {
    %c0_i32 = arith.constant 0 : i32
    %c0_i32_0 = arith.constant 0 : i32
    return %arg0, %c0_i32, %arg2 : i32, i32, i32
  }
  func.func @transform_2(%arg0: i32, %arg1: i32, %arg2: i32) -> (i32, i32) {
    %c0_i32 = arith.constant 0 : i32
    %c0_i32_0 = arith.constant 0 : i32
    return %c0_i32, %arg1 : i32, i32
  }
  func.func @transform_3(%arg0: i32, %arg1: i32, %arg2: i32) -> (i32, i32) {
    %c0_i32 = arith.constant 0 : i32
    %c0_i32_0 = arith.constant 0 : i32
    return %c0_i32, %arg1 : i32, i32
  }
  func.func @transform_4(%arg0: i32, %arg1: i32, %arg2: i32) -> (i32, i32, i32) {
    %c0_i32 = arith.constant 0 : i32
    %c0_i32_0 = arith.constant 0 : i32
    return %arg0, %c0_i32, %arg1 : i32, i32, i32
  }
}

</mosaic_0001>

<bundles_post_ra>
// kernel: tpu_custom_call.1
= control target key start
LH: loop header
LB: loop body
LE: loop exit
PB: predicated region body
PF: predicated region fallthrough
CT: control target
= control target key end

     0   :  { %9 = vsyncpa [#allocation3], 0  ;;  %s853_s0 = inlined_call_operand.vmem [shape: f32[2,8,2], index: 0, kind: input, shape index: {}]   ;;  %s854_s1 = inlined_call_operand.vmem [shape: f32[2,1,8], index: 1, kind: input, shape index: {}]   ;;  %s855_s2 = inlined_call_operand.vmem [shape: f32[2,128], index: 2, kind: input, shape index: {}]   ;;  %s856_s3 = inlined_call_operand.vmem [shape: f32[1,128], index: 3, kind: input, shape index: {}]   ;;  %s857_s4 = inlined_call_operand.hbm [shape: f32[2,1,128], index: 4, kind: output, shape index: {}]  }
   0x1   :  { %11 = vsyncpa [#allocation3 + $0x1], 0  ;;  %s722_s15 = smov 0   ;;  %s724_s16 = smov 0  }
   0x2   :  { %s726_s17 = smov 0   ;;  %s728_s18 = smov 0  }
   0x3   :  { %s730_s19 = smov 0   ;;  %s732_s20 = smov 0  }
   0x4 LB: > { %s529_s21 = sadd.s32 4294967295, %s690_s20   ;;  %s530_s22 = sadd.s32 4294967294, %s690_s20   ;;  %s690_s20 = sphi %s732_s20, %s17_s20   ;;  %s686_s19 = sphi %s730_s19, %s864_s19   ;;  %s682_s18 = sphi %s728_s18, %s863_s18   ;;  %s678_s17 = sphi %s726_s17, %s862_s17   ;;  %s674_s16 = sphi %s724_s16, %s861_s16   ;;  %s670_s15 = sphi %s722_s15, %s860_s15  }
   0x5   : > { %s36_s23 = sadd.s32 1, %s686_s19  ;;  %s153_s24 = sadd.s32 1, %s678_s17 }
   0x6   : > { %p38_p0 = scmp.ge.s32.totalorder %s36_s23, 2  ;;  %p163_p1 = scmp.ne.s32.totalorder %s678_s17, %s674_s16 }
   0x7   : > { %p164_p2 = scmp.eq.s32.totalorder %s529_s21, 1  ;;  %p169_p3 = scmp.ne.s32.totalorder %s674_s16, %s670_s15 }
   0x8   : > { %s866_s23 = smov (%p38_p0, %s36_s23), 0  ;;  %p170_p5 = scmp.eq.s32.totalorder %s530_s22, 1 }
   0x9   : > { %p762_p4 = por %p164_p2, %p163_p1  ;;  %s148_s26 = ssub.s32 %s686_s19, %s866_s23 }
   0xa   : > { %p535_p6 = scmp.ge.s32.totalorder %s690_s20, 1  ;;  %p151_p7 = scmp.eq.s32.totalorder %s148_s26, 0 }
   0xb   : > { %p769_p8 = por %p170_p5, %p169_p3  ;;  %p220_p9 = scmp.lt.s32.totalorder %s690_s20, 3 }
   0xc   : > { %s775_s28 = scalar_select %p151_p7, %s678_s17, %s153_s24  }
   0xd   : > { %p221_p10 = pnand %p535_p6, %p220_p9 }
   0xe   : > { %p260_p11 = scmp.lt.s32.totalorder (!%p221_p10), %s682_s18, 1  ;;  %s258_s8 = sand.u32 (!%p221_p10), 1, %s674_s16  }
   0xf   : > { %224 = sbr.rel (%p221_p10) target bundleno = 399 (0x18f), region = 36  ;;  %s788_s9 = scalar_lea.vmem (!%p221_p10), [#allocation2], %s258_s8 }
  0x10   : > { %s420_s5 = sshll.u32 (!%p221_p10), %s788_s9, 4  ;;  %s696_s12 = smov (!%p221_p10), [#allocation2]   ;;  %s421_s5 = int_to_ptr.vmem [resolvable:$true] %s420_s5 }
  0x11   : > { %s614_s11 = scalar_lea.vmem (!%p221_p10), %s421_s5, 16 }
  0x12   : > { %p615_p12 = scmp.ne.s32.totalorder (!%p221_p10), %s421_s5, %s614_s11 }
  0x14   : > { %v692_v0 = vmov 0   ;;  %s779_s29 = scalar_select %p260_p11, %s682_s18, 1  ;;  %v693_v2 = vmov 1   ;;  %v694_v3 = vmov 0.0   ;;  %vm695_vm0 = vmmov 0  }
  0x15   : > { %610 = vset.pattern.permute.xlu0 %v692_v0  ;;  %546 = vmatprep.subr.mxu0 %v694_v3  ;;  %284 = vst [vmem:[%s788_s9] sm:$0x1] %v694_v3  ;;  %v537_v5 = vld [vmem:[%s855_s2] ss:$0 sm:$0xff]  ;;  %v538_v6 = vld [vmem:[%s855_s2 + $0x1] ss:$0 sm:$0xff]  ;;  %vm330_vm1 = vcmask 64512   ;;  %p616_p13 = pnand %p615_p12, %p762_p4 }
  0x16   : > { %s536_s30 = sshll.u32 %s779_s29, 3  ;;  %548 = vmatprep.mubr.msk.f32.mxu0 %vm695_vm0, %v694_v3  ;;  %v539_v12 = vld [vmem:[%s856_s3] ss:$0 sm:$0xff]  ;;  %s272_s26 = scalar_lea.vmem %s854_s1, %s779_s29 }
  0x17   : > { %s266_s7 = scalar_lea.vmem %s853_s0, %s536_s30  ;;  %v329_v25 = vld [vmem:[%s272_s26] sm:$0x1]  ;;  %s541_s30 = sshll.u32 %s682_s18, 4 }
  0x18   : > { %v286_v1 = vld [vmem:[%s266_s7] sm:$0xff]  ;;  %s810_s10 = scalar_lea.hbm %s857_s4, %s541_s30  ;;  %s407_s29 = scalar_lea.sflag [#allocation3], %s258_s8 }
  0x19   : > { %289 = vperm.xlu0 %610, %v286_v1   ;;  %p617_p0 = pneg %p616_p13  ;;  %s618_s18 = sshll.u32 %s696_s12, 4  ;;  %s619_s18 = int_to_ptr.vmem [resolvable:$false] %s618_s18 }
  0x1a   : > { %s620_s13 = scalar_lea.vmem %s619_s18, 32  ;;  %p621_p1 = scmp.lt.s32.totalorder %s421_s5, %s619_s18 }
  0x1b   : > { %p622_p2 = scmp.lt.s32.totalorder %s620_s13, %s614_s11 }
  0x1c   : > { %v328_v26 = vld [vmem:[%s788_s9] sm:$0x1] }
  0x1d   : > { %611 = vset.pattern.permute.xlu0 %v693_v2  ;;  %p623_p3 = por %p622_p2, %p621_p1 }
  0x1e   : > { %300 = vperm.xlu0 %611, %v286_v1  }
  0x1f   : > { %p624_p5 = pnand %p623_p3, %p617_p0 }
  0x94   : > { %v290_v4 = vpop.permute.xlu0 %289 }
  0x95   : > { %v296_v7 = vsub.f32 %v290_v4, %v537_v5 }
  0x97   : > { %v297_v10 = vand.u32 2147483647, %v296_v7 }
  0x99   : > { %v301_v8 = vpop.permute.xlu0 %300 }
  0x9a   : > { %v307_v9 = vsub.f32 %v301_v8, %v538_v6 }
  0x9c   : > { %v308_v11 = vand.u32 2147483647, %v307_v9 }
  0x9e   : > { %v309_v13 = vadd.f32 %v308_v11, %v297_v10 }
  0xa0   : > { %v318_v14 = vsub.f32 %v539_v12, %v309_v13  ;;  %v311_v16 = vadd.f32 1.0, %v309_v13 }
  0xa2   : > { %v319_v15 = vand.u32 2147483647, %v318_v14 }
  0xa4   : > { %v320_v17 = vadd.f32 1.0, %v319_v15 }
  0xa6   : > { %v321_v18 = vmul.f32 %v320_v17, %v311_v16  ;;  %v326_v23 = vsub.f32 %v320_v17, %v311_v16 }
  0xa8   : > { %612 = vrcp.f32 %v321_v18 }
  0xb5   : > { %v613_v19 = vpop.eup %612 }
  0xb6   : > { %v323_v20 = vmul.f32 %v613_v19, %v321_v18 }
  0xb8   : > { %v324_v21 = vsub.f32 2.0, %v323_v20 }
  0xba   : > { %v325_v22 = vmul.f32 %v613_v19, %v324_v21 }
  0xbc   : > { %v327_v24 = vmul.f32 %v326_v23, %v325_v22 }
  0xbe   : > { %547 = vmatpush3.msra.mxu0 %v327_v24 }
  0xbf   : > { %549 = vmatmul.mubr.msk.f32.vlgmr.msra.gmra.mxu0 %vm330_vm1, %v329_v25 }
 0x17f   : > { %v400_v27 = vpop.f32.mrf.mxu0 }
 0x180   : > { %v404_v28 = vadd.f32 %v400_v27, %v328_v26 }
 0x181   : > { %v550_v29 = vpop.f32.mrf.mxu0 }
 0x182   : > { %405 = vst [vmem:[%s788_s9] sm:$0x1] %v404_v28 }
 0x183   : > { %627 = shalt.err (!%p624_p5)
}
 0x184   : > { %s628_s9 = scalar_lea.hbm %s810_s10, 16  ;;  %s632_s21 = scalar_lea.hbm %s857_s4, 32 }
 0x185   : > { %p629_p6 = scmp.ne.s32.totalorder %s810_s10, %s628_s9  ;;  %p633_p10 = scmp.lt.s32.totalorder %s810_s10, %s857_s4 }
 0x186   : > { %p634_p11 = scmp.lt.s32.totalorder %s632_s21, %s628_s9 }
 0x187   : > { %p630_p7 = pnand %p629_p6, %p762_p4 }
 0x188   : > { %p635_p12 = por %p634_p11, %p633_p10 }
 0x189   : > { %p631_p9 = pneg %p630_p7 }
 0x18b   : > { %p636_p13 = pnand %p635_p12, %p631_p9 }
 0x18d   : > { %639 = shalt.err (!%p636_p13)
}
 0x18e   : > { %551 = dma.vmem_to_hbm [thread:$0]  (%p762_p4), %s421_s5, 16, %s810_s10, %s407_s29  }
 0x18f PF: > { %p557_p0 = scmp.ge.s32.totalorder %s690_s20, 2  ;;  %s432_s26 = sand.u32 1, %s670_s15  }
 0x190   : > { %s433_s30 = scalar_lea.sflag [#allocation3], %s432_s26 }
 0x191   : > { %p554_p1 = pnand %p557_p0, %p769_p8 }
 0x193   : > { %p555_p2 = pneg %p554_p1 }
 0x195   : > { %665 = dma.done.wait (%p555_p2), %s433_s30, 16  }
 0x196   : > { %667 = vsyncadd (%p555_p2), %s433_s30, 4294967280  ;;  %s17_s20 = sadd.s32 1, %s690_s20   ;;  %s860_s15 = smov %s674_s16 }
 0x197   : > { %p14_p3 = scmp.ge.s32.totalorder %s17_s20, 4   ;;  %s861_s16 = smov %s678_s17 }
 0x198   : > { %s862_s17 = smov %s775_s28  ;;  %s863_s18 = smov %s686_s19 }
 0x199   : > { %s864_s19 = smov %s866_s23  ;;  %16 = sbr.rel (!%p14_p3) target bundleno = 4 (0x4), region = 84 }
 0x19e   :  { %437 = vsyncpa [#allocation3], 1 }
 0x19f   :  { %439 = vsyncpa [#allocation3 + $0x1], 1 }

</bundles_post_ra>
